<compile_context>
chip_gen: v7x
topology: tpu7x:2x2x1
jax: 0.10.0
libtpu: 0.0.40
codegen_flags: <defaults>
</compile_context>

<pallas_src>
import functools

import numpy as np
import jax
import jax.numpy as jnp
from jax.experimental import pallas as pl
from jax.experimental.pallas import tpu as pltpu


# ----------------------------- fused Pallas kernel --------------------------

def _encoder_gan_kernel(cos_ref, sin_ref, db_ref,               # SMEM scalars
                        cols_ref, w_ref, dw_ref, noise_ref,     # VMEM tiles
                        re_ref, im_ref, loss_ref,               # outputs
                        *, k, P, include_real):
    f32 = jnp.float32
    b = pl.program_id(0)

    # Encoding conv for this sample as one aligned MXU matmul (Cpad,Kpad)@(Kpad,P);
    # the conv bias rides on the padded ones-row of `cols`, so no separate add.
    a = jnp.dot(w_ref[...], cols_ref[...], preferred_element_type=f32)    # (Cpad, P)

    noise = noise_ref[0]                     # (Cpad, k*P): segment 0 real, 1..k-1 fakes
    dw = dw_ref[...]                         # (Cpad, P) discriminator weight (pad rows = 0)
    db = db_ref[0]                           # discriminator bias scalar

    def fsum(v):                             # full reduce of a (Cpad, P) block -> (1, 1)
        return jnp.sum(jnp.sum(v, axis=1, keepdims=True), axis=0, keepdims=True)

    def sigmoid(t):                          # numerically stable logistic on (1, 1)
        return jnp.where(t >= 0.0,
                         1.0 / (1.0 + jnp.exp(-t)),
                         jnp.exp(t) / (1.0 + jnp.exp(t)))

    def disc_bce(feat, label):
        # torch module: Linear -> Sigmoid, then BCEWithLogitsLoss applied to that output
        # ("double sigmoid", kept to match the reference).  z = sigmoid(..) > 0, so the
        # stable BCEWithLogits form reduces to z - z*y + log(1 + exp(-z)).
        z = sigmoid(fsum(feat * dw) + db)
        return z - z * label + jnp.log(1.0 + jnp.exp(-z))

    a_mag = jnp.sqrt(fsum(a * a))                                  # ||a_b||_F   (1, 1)
    # One sublane pass over the whole noise group; per-segment lane sums below.
    n_sq_cols = jnp.sum(noise * noise, axis=0, keepdims=True)      # (1, k*P)

    loss = jnp.zeros((1, 1), f32)
    for m in range(k):                                             # k (anonymity) is small & static
        n_seg = noise[:, m * P:(m + 1) * P]                        # (Cpad, P)
        n_mag2 = jnp.sum(n_sq_cols[:, m * P:(m + 1) * P], axis=1, keepdims=True)
        scale = a_mag * jax.lax.rsqrt(n_mag2 + 1e-20)              # |a| / |noise| (eps guards 0)
        bb = n_seg * scale
        c = cos_ref[b, m]
        s = sin_ref[b, m]
        x_re = a * c - bb * s                                      # Re{(a + i*bb) * e^{i*ang}}
        if m == 0:
            # real path: x = complex(a, b/|b|*|a|) * exp(i*theta)
            re_ref[0] = x_re
            im_ref[0] = a * s + bb * c
            if include_real:                                       # discriminator step sees raw a
                loss = loss + disc_bce(a, 1.0)
        else:
            # fake path: discriminator only ever sees fake_x.real
            label = 0.0 if include_real else 1.0
            loss = loss + disc_bce(x_re, label)

    loss_ref[0] = loss                                             # per-sample contribution


# ----------------------------- EncoderGAN forward ---------------------------

def encoder_gan_forward(image_nchw, optimizer_idx, params, rng_key, k=2):
    """Mirrors EncoderGAN.forward: returns (loss, x, thetas)."""
    f32 = jnp.float32
    image_nchw = image_nchw.astype(f32)
    B, Cin, H, W = image_nchw.shape
    Cout = params["conv_w"].shape[0]
    P = H * W                                   # per-sample spatial lanes (mult of 128 here)
    Bf = (k - 1) * B
    Cpad = max(8, -(-Cout // 8) * 8)            # pad channels -> full sublane tiles
    K9 = 9 * Cin
    Kpad = -(-(K9 + 1) // 8) * 8                # +1 ones-row carries the conv bias

    # --- im2col for the 3x3 / padding=1 encoding conv, laid out (Kpad, B*H*W) ---
    xp = jnp.pad(image_nchw, ((0, 0), (0, 0), (1, 1), (1, 1)))
    taps = [xp[:, :, ky:ky + H, kx:kx + W] for ky in range(3) for kx in range(3)]
    cols = jnp.stack(taps, axis=0).transpose(0, 2, 1, 3, 4).reshape(K9, B * P)
    cols_p = jnp.concatenate(
        [cols, jnp.ones((1, B * P), f32), jnp.zeros((Kpad - K9 - 1, B * P), f32)], axis=0)

    # --- weights padded to (Cpad, Kpad); conv bias folded into column K9 ---
    w_mat = params["conv_w"].astype(f32).transpose(0, 2, 3, 1).reshape(Cout, K9)
    w_row = jnp.concatenate(
        [w_mat, params["conv_b"].astype(f32).reshape(Cout, 1),
         jnp.zeros((Cout, Kpad - K9 - 1), f32)], axis=1)
    w_p = jnp.concatenate([w_row, jnp.zeros((Cpad - Cout, Kpad), f32)], axis=0)

    dw = params["lin_w"].astype(f32).reshape(Cout, P)               # NCHW-flat -> (C, H*W)
    dw_p = jnp.concatenate([dw, jnp.zeros((Cpad - Cout, P), f32)], axis=0)
    db = params["lin_b"].astype(f32).reshape(1)

    # --- angles + Gaussian noise (jax.random in the wrapper; runs on TPU and interpret) ---
    kth, kdth, kb, kfb = jax.random.split(rng_key, 4)
    thetas = jax.random.uniform(kth, (B, 1, 1, 1), f32, 0.0, 2.0 * np.pi)
    delta_thetas = jax.random.uniform(kdth, (Bf, 1, 1, 1), f32, 0.0, np.pi)
    dth_bk = delta_thetas.reshape(k - 1, B).T                       # (B, k-1): fake j = m*B + b
    all_ang = jnp.concatenate([thetas.reshape(B, 1), dth_bk], axis=1)   # (B, k)
    cos_t, sin_t = jnp.cos(all_ang), jnp.sin(all_ang)

    noise_r = jax.random.normal(kb, (B, 1, Cout, P), f32)           # real-path noise b
    noise_f = jax.random.normal(kfb, (Bf, Cout, P), f32).reshape(k - 1, B, Cout, P)
    noise = jnp.concatenate([noise_r, noise_f.transpose(1, 0, 2, 3)], axis=1)  # (B, k, Cout, P)
    noise = noise.transpose(0, 2, 1, 3).reshape(B, Cout, k * P)     # segments along lanes
    noise = jnp.pad(noise, ((0, 0), (0, Cpad - Cout), (0, 0)))      # zero pad channels

    include_real = (optimizer_idx == 1)
    kern = functools.partial(_encoder_gan_kernel, k=k, P=P, include_real=include_real)

    smem = pl.BlockSpec(memory_space=pltpu.MemorySpace.SMEM)
    re, im, loss_parts = pl.pallas_call(
        kern,
        grid=(B,),
        in_specs=[
            smem, smem, smem,                                        # cos, sin, bias scalars
            pl.BlockSpec((Kpad, P), lambda b: (0, b)),               # cols tile (this sample)
            pl.BlockSpec((Cpad, Kpad), lambda b: (0, 0)),            # conv weight (+bias col)
            pl.BlockSpec((Cpad, P), lambda b: (0, 0)),               # discriminator weight
            pl.BlockSpec((1, Cpad, k * P), lambda b: (b, 0, 0)),     # noise group (this sample)
        ],
        out_specs=(
            pl.BlockSpec((1, Cpad, P), lambda b: (b, 0, 0)),         # real part
            pl.BlockSpec((1, Cpad, P), lambda b: (b, 0, 0)),         # imag part
            pl.BlockSpec((1, 1, 1), lambda b: (b, 0, 0)),            # per-sample loss part
        ),
        out_shape=(
            jax.ShapeDtypeStruct((B, Cpad, P), f32),
            jax.ShapeDtypeStruct((B, Cpad, P), f32),
            jax.ShapeDtypeStruct((B, 1, 1), f32),
        ),
        compiler_params=pltpu.CompilerParams(
            dimension_semantics=("parallel",),
            vmem_limit_bytes=64 * 1024 * 1024,
        ),
    )(cos_t, sin_t, db, cols_p, w_p, dw_p, noise)

    # (B, Cpad, P) -> (B, Cout, H, W) complex feature: slice pad channels, no transpose.
    x = jax.lax.complex(re[:, :Cout, :].reshape(B, Cout, H, W),
                        im[:, :Cout, :].reshape(B, Cout, H, W))
    n_rows = B * k if include_real else B * (k - 1)                  # BCE 'mean' denominator
    loss = jnp.sum(loss_parts) / float(n_rows)
    return loss, x, thetas


_forward_jit = jax.jit(encoder_gan_forward, static_argnums=(1,), static_argnames=("k",))


# ----------------------------- main ------------------------------------------

if __name__ == "__main__":
    B, Cin, H, W = 2, 4, 16, 16
    Cout, k = 4, 2
    discrim_shape = Cout * H * W

    key = jax.random.PRNGKey(0)
    kimg, kcw, kcb, klw, knoise = jax.random.split(key, 5)

    image_batch = jax.random.normal(kimg, (B, Cin, H, W), jnp.float32)
    params = {
        "conv_w": 0.1 * jax.random.normal(kcw, (Cout, Cin, 3, 3), jnp.float32),
        "conv_b": 0.05 * jax.random.normal(kcb, (Cout,), jnp.float32),
        "lin_w": 0.02 * jax.random.normal(klw, (1, discrim_shape), jnp.float32),
        "lin_b": jnp.zeros((1,), jnp.float32),
    }

    for opt_idx in (0, 1, 2):   # generator step, discriminator step, full-model step
        loss, x, thetas = _forward_jit(image_batch, opt_idx, params, knoise, k=k)
        jax.block_until_ready((loss, x, thetas))
        assert x.shape == (B, Cout, H, W) and x.dtype == jnp.complex64
        assert thetas.shape == (B, 1, 1, 1)
        assert bool(jnp.isfinite(loss))

    print("KERNEL_OK")
</pallas_src>

<mosaic_0001>
module attributes {stable_mosaic.version = 11 : i64} {
  func.func @_encoder_gan_kernel(%arg0: i32, %arg1: memref<2x2xf32, #tpu.memory_space<smem>>, %arg2: memref<2x2xf32, #tpu.memory_space<smem>>, %arg3: memref<1xf32, #tpu.memory_space<smem>>, %arg4: memref<40x256xf32, #tpu.memory_space<vmem>>, %arg5: memref<8x40xf32, #tpu.memory_space<vmem>>, %arg6: memref<8x256xf32, #tpu.memory_space<vmem>>, %arg7: memref<1x8x512xf32, #tpu.memory_space<vmem>>, %arg8: memref<1x8x256xf32, #tpu.memory_space<vmem>>, %arg9: memref<1x8x256xf32, #tpu.memory_space<vmem>>, %arg10: memref<1x1x1xf32, #tpu.memory_space<vmem>>) attributes {dimension_semantics = [#tpu.dimension_semantics<parallel>], iteration_bounds = array<i64: 2>, scalar_prefetch = 0 : i64, scratch_operands = 0 : i64, tpu.core_type = #tpu.core_type<tc>, window_params = [{transform_indices = @transform_0, window_bounds = array<i64: 2, 2>}, {transform_indices = @transform_1, window_bounds = array<i64: 2, 2>}, {transform_indices = @transform_2, window_bounds = array<i64: 1>}, {transform_indices = @transform_3, window_bounds = array<i64: 40, 256>}, {pipeline_mode = #tpu.pipeline_mode<synchronous>, transform_indices = @transform_4, window_bounds = array<i64: 8, 40>}, {pipeline_mode = #tpu.pipeline_mode<synchronous>, transform_indices = @transform_5, window_bounds = array<i64: 8, 256>}, {transform_indices = @transform_6, window_bounds = array<i64: 1, 8, 512>}, {transform_indices = @transform_7, window_bounds = array<i64: 1, 8, 256>}, {transform_indices = @transform_8, window_bounds = array<i64: 1, 8, 256>}, {transform_indices = @transform_9, window_bounds = array<i64: 1, 1, 1>}]} {
    %c0 = arith.constant 0 : index
    %c0_0 = arith.constant 0 : index
    %0 = vector.load %arg5[%c0, %c0_0] : memref<8x40xf32, #tpu.memory_space<vmem>>, vector<8x40xf32>
    %c0_1 = arith.constant 0 : index
    %c0_2 = arith.constant 0 : index
    %1 = vector.load %arg4[%c0_1, %c0_2] : memref<40x256xf32, #tpu.memory_space<vmem>>, vector<40x256xf32>
    %cst = arith.constant dense<0.000000e+00> : vector<8x256xf32>
    %2 = tpu.matmul %0, %1, %cst {dimension_numbers = #tpu.dot_dimension_numbers<[1], [0], [0], [1], [0, 0, 1, 1], [], []>} : vector<8x40xf32>, vector<40x256xf32>, vector<8x256xf32> -> vector<8x256xf32>
    %c0_3 = arith.constant 0 : index
    %c0_4 = arith.constant 0 : index
    %c0_5 = arith.constant 0 : index
    %3 = vector.load %arg7[%c0_3, %c0_4, %c0_5] : memref<1x8x512xf32, #tpu.memory_space<vmem>>, vector<1x8x512xf32>
    %4 = vector.shape_cast %3 : vector<1x8x512xf32> to vector<8x512xf32>
    %c0_6 = arith.constant 0 : index
    %c0_7 = arith.constant 0 : index
    %5 = vector.load %arg6[%c0_6, %c0_7] : memref<8x256xf32, #tpu.memory_space<vmem>>, vector<8x256xf32>
    %c0_8 = arith.constant 0 : index
    %6 = memref.load %arg3[%c0_8] : memref<1xf32, #tpu.memory_space<smem>>
    %7 = arith.mulf %2, %2 : vector<8x256xf32>
    %cst_9 = arith.constant dense<0.000000e+00> : vector<8xf32>
    %8 = vector.multi_reduction <add>, %7, %cst_9 [1] : vector<8x256xf32> to vector<8xf32>
    %9 = vector.shape_cast %8 : vector<8xf32> to vector<8x1xf32>
    %cst_10 = arith.constant dense<0.000000e+00> : vector<1xf32>
    %10 = vector.multi_reduction <add>, %9, %cst_10 [0] : vector<8x1xf32> to vector<1xf32>
    %11 = vector.shape_cast %10 : vector<1xf32> to vector<1x1xf32>
    %12 = math.sqrt %11 : vector<1x1xf32>
    %13 = arith.mulf %4, %4 : vector<8x512xf32>
    %cst_11 = arith.constant dense<0.000000e+00> : vector<512xf32>
    %14 = vector.multi_reduction <add>, %13, %cst_11 [0] : vector<8x512xf32> to vector<512xf32>
    %15 = vector.shape_cast %14 : vector<512xf32> to vector<1x512xf32>
    %cst_12 = arith.constant 0.000000e+00 : f32
    %16 = vector.broadcast %cst_12 : f32 to vector<1x1xf32>
    %17 = vector.extract_strided_slice %4 {offsets = [0, 0], sizes = [8, 256], strides = [1, 1]} : vector<8x512xf32> to vector<8x256xf32>
    %18 = vector.extract_strided_slice %15 {offsets = [0, 0], sizes = [1, 256], strides = [1, 1]} : vector<1x512xf32> to vector<1x256xf32>
    %cst_13 = arith.constant dense<0.000000e+00> : vector<1xf32>
    %19 = vector.multi_reduction <add>, %18, %cst_13 [1] : vector<1x256xf32> to vector<1xf32>
    %20 = vector.shape_cast %19 : vector<1xf32> to vector<1x1xf32>
    %cst_14 = arith.constant 9.99999968E-21 : f32
    %21 = vector.broadcast %cst_14 : f32 to vector<1x1xf32>
    %22 = arith.addf %20, %21 : vector<1x1xf32>
    %23 = math.rsqrt %22 : vector<1x1xf32>
    %24 = arith.mulf %12, %23 : vector<1x1xf32>
    %25 = vector.broadcast %24 : vector<1x1xf32> to vector<8x256xf32>
    %26 = arith.mulf %17, %25 : vector<8x256xf32>
    %27 = arith.index_cast %arg0 : i32 to index
    %c0_15 = arith.constant 0 : index
    %28 = memref.load %arg1[%27, %c0_15] : memref<2x2xf32, #tpu.memory_space<smem>>
    %29 = arith.index_cast %arg0 : i32 to index
    %c0_16 = arith.constant 0 : index
    %30 = memref.load %arg2[%29, %c0_16] : memref<2x2xf32, #tpu.memory_space<smem>>
    %31 = vector.broadcast %28 : f32 to vector<8x256xf32>
    %32 = arith.mulf %2, %31 : vector<8x256xf32>
    %33 = vector.broadcast %30 : f32 to vector<8x256xf32>
    %34 = arith.mulf %26, %33 : vector<8x256xf32>
    %35 = arith.subf %32, %34 : vector<8x256xf32>
    %c0_17 = arith.constant 0 : index
    %c0_18 = arith.constant 0 : index
    %c0_19 = arith.constant 0 : index
    %36 = vector.load %arg8[%c0_17, %c0_18, %c0_19] : memref<1x8x256xf32, #tpu.memory_space<vmem>>, vector<1x8x256xf32>
    %37 = vector.shape_cast %36 : vector<1x8x256xf32> to vector<8x256xf32>
    %38 = vector.shape_cast %35 : vector<8x256xf32> to vector<1x8x256xf32>
    tpu.vector_store %arg8[%c0_17, %c0_18, %c0_19], %38 {strides = array<i32>} : memref<1x8x256xf32, #tpu.memory_space<vmem>>, vector<1x8x256xf32>,
    %39 = vector.broadcast %30 : f32 to vector<8x256xf32>
    %40 = arith.mulf %2, %39 : vector<8x256xf32>
    %41 = vector.broadcast %28 : f32 to vector<8x256xf32>
    %42 = arith.mulf %26, %41 : vector<8x256xf32>
    %43 = arith.addf %40, %42 : vector<8x256xf32>
    %c0_20 = arith.constant 0 : index
    %c0_21 = arith.constant 0 : index
    %c0_22 = arith.constant 0 : index
    %44 = vector.load %arg9[%c0_20, %c0_21, %c0_22] : memref<1x8x256xf32, #tpu.memory_space<vmem>>, vector<1x8x256xf32>
    %45 = vector.shape_cast %44 : vector<1x8x256xf32> to vector<8x256xf32>
    %46 = vector.shape_cast %43 : vector<8x256xf32> to vector<1x8x256xf32>
    tpu.vector_store %arg9[%c0_20, %c0_21, %c0_22], %46 {strides = array<i32>} : memref<1x8x256xf32, #tpu.memory_space<vmem>>, vector<1x8x256xf32>,
    %47 = vector.extract_strided_slice %4 {offsets = [0, 256], sizes = [8, 256], strides = [1, 1]} : vector<8x512xf32> to vector<8x256xf32>
    %48 = vector.extract_strided_slice %15 {offsets = [0, 256], sizes = [1, 256], strides = [1, 1]} : vector<1x512xf32> to vector<1x256xf32>
    %cst_23 = arith.constant dense<0.000000e+00> : vector<1xf32>
    %49 = vector.multi_reduction <add>, %48, %cst_23 [1] : vector<1x256xf32> to vector<1xf32>
    %50 = vector.shape_cast %49 : vector<1xf32> to vector<1x1xf32>
    %cst_24 = arith.constant 9.99999968E-21 : f32
    %51 = vector.broadcast %cst_24 : f32 to vector<1x1xf32>
    %52 = arith.addf %50, %51 : vector<1x1xf32>
    %53 = math.rsqrt %52 : vector<1x1xf32>
    %54 = arith.mulf %12, %53 : vector<1x1xf32>
    %55 = vector.broadcast %54 : vector<1x1xf32> to vector<8x256xf32>
    %56 = arith.mulf %47, %55 : vector<8x256xf32>
    %57 = arith.index_cast %arg0 : i32 to index
    %c1 = arith.constant 1 : index
    %58 = memref.load %arg1[%57, %c1] : memref<2x2xf32, #tpu.memory_space<smem>>
    %59 = arith.index_cast %arg0 : i32 to index
    %c1_25 = arith.constant 1 : index
    %60 = memref.load %arg2[%59, %c1_25] : memref<2x2xf32, #tpu.memory_space<smem>>
    %61 = vector.broadcast %58 : f32 to vector<8x256xf32>
    %62 = arith.mulf %2, %61 : vector<8x256xf32>
    %63 = vector.broadcast %60 : f32 to vector<8x256xf32>
    %64 = arith.mulf %56, %63 : vector<8x256xf32>
    %65 = arith.subf %62, %64 : vector<8x256xf32>
    %66 = arith.mulf %65, %5 : vector<8x256xf32>
    %cst_26 = arith.constant dense<0.000000e+00> : vector<8xf32>
    %67 = vector.multi_reduction <add>, %66, %cst_26 [1] : vector<8x256xf32> to vector<8xf32>
    %68 = vector.shape_cast %67 : vector<8xf32> to vector<8x1xf32>
    %cst_27 = arith.constant dense<0.000000e+00> : vector<1xf32>
    %69 = vector.multi_reduction <add>, %68, %cst_27 [0] : vector<8x1xf32> to vector<1xf32>
    %70 = vector.shape_cast %69 : vector<1xf32> to vector<1x1xf32>
    %71 = vector.broadcast %6 : f32 to vector<1x1xf32>
    %72 = arith.addf %70, %71 : vector<1x1xf32>
    %cst_28 = arith.constant 0.000000e+00 : f32
    %73 = vector.broadcast %cst_28 : f32 to vector<1x1xf32>
    %74 = arith.cmpf oge, %72, %73 : vector<1x1xf32>
    %cst_29 = arith.constant 0.000000e+00 : f32
    %75 = vector.broadcast %cst_29 : f32 to vector<1x1xf32>
    %76 = arith.subf %75, %72 : vector<1x1xf32>
    %77 = math.exp %76 : vector<1x1xf32>
    %cst_30 = arith.constant 1.000000e+00 : f32
    %78 = vector.broadcast %cst_30 : f32 to vector<1x1xf32>
    %79 = arith.addf %78, %77 : vector<1x1xf32>
    %cst_31 = arith.constant 1.000000e+00 : f32
    %80 = vector.broadcast %cst_31 : f32 to vector<1x1xf32>
    %81 = arith.divf %80, %79 : vector<1x1xf32>
    %82 = math.exp %72 : vector<1x1xf32>
    %83 = math.exp %72 : vector<1x1xf32>
    %cst_32 = arith.constant 1.000000e+00 : f32
    %84 = vector.broadcast %cst_32 : f32 to vector<1x1xf32>
    %85 = arith.addf %84, %83 : vector<1x1xf32>
    %86 = arith.divf %82, %85 : vector<1x1xf32>
    %87 = arith.select %74, %81, %86 : vector<1x1xi1>, vector<1x1xf32>
    %cst_33 = arith.constant 1.000000e+00 : f32
    %88 = vector.broadcast %cst_33 : f32 to vector<1x1xf32>
    %89 = arith.mulf %87, %88 : vector<1x1xf32>
    %90 = arith.subf %87, %89 : vector<1x1xf32>
    %cst_34 = arith.constant 0.000000e+00 : f32
    %91 = vector.broadcast %cst_34 : f32 to vector<1x1xf32>
    %92 = arith.subf %91, %87 : vector<1x1xf32>
    %93 = math.exp %92 : vector<1x1xf32>
    %cst_35 = arith.constant 1.000000e+00 : f32
    %94 = vector.broadcast %cst_35 : f32 to vector<1x1xf32>
    %95 = arith.addf %94, %93 : vector<1x1xf32>
    %96 = math.log %95 : vector<1x1xf32>
    %97 = arith.addf %90, %96 : vector<1x1xf32>
    %98 = arith.addf %16, %97 : vector<1x1xf32>
    %c0_36 = arith.constant 0 : index
    %c0_37 = arith.constant 0 : index
    %c0_38 = arith.constant 0 : index
    %99 = vector.load %arg10[%c0_36, %c0_37, %c0_38] : memref<1x1x1xf32, #tpu.memory_space<vmem>>, vector<1x1x1xf32>
    %100 = vector.shape_cast %99 : vector<1x1x1xf32> to vector<1x1xf32>
    %101 = vector.shape_cast %98 : vector<1x1xf32> to vector<1x1x1xf32>
    tpu.vector_store %arg10[%c0_36, %c0_37, %c0_38], %101 {strides = array<i32>} : memref<1x1x1xf32, #tpu.memory_space<vmem>>, vector<1x1x1xf32>,
    return
  }
  func.func @transform_0(%arg0: i32) -> (i32, i32) {
    %c0_i32 = arith.constant 0 : i32
    %c0_i32_0 = arith.constant 0 : i32
    %c0_i32_1 = arith.constant 0 : i32
    return %c0_i32, %c0_i32_0 : i32, i32
  }
  func.func @transform_1(%arg0: i32) -> (i32, i32) {
    %c0_i32 = arith.constant 0 : i32
    %c0_i32_0 = arith.constant 0 : i32
    %c0_i32_1 = arith.constant 0 : i32
    return %c0_i32, %c0_i32_0 : i32, i32
  }
  func.func @transform_2(%arg0: i32) -> i32 {
    %c0_i32 = arith.constant 0 : i32
    %c0_i32_0 = arith.constant 0 : i32
    return %c0_i32 : i32
  }
  func.func @transform_3(%arg0: i32) -> (i32, i32) {
    %c0_i32 = arith.constant 0 : i32
    %c0_i32_0 = arith.constant 0 : i32
    return %c0_i32, %arg0 : i32, i32
  }
  func.func @transform_4(%arg0: i32) -> (i32, i32) {
    %c0_i32 = arith.constant 0 : i32
    %c0_i32_0 = arith.constant 0 : i32
    %c0_i32_1 = arith.constant 0 : i32
    return %c0_i32, %c0_i32_0 : i32, i32
  }
  func.func @transform_5(%arg0: i32) -> (i32, i32) {
    %c0_i32 = arith.constant 0 : i32
    %c0_i32_0 = arith.constant 0 : i32
    %c0_i32_1 = arith.constant 0 : i32
    return %c0_i32, %c0_i32_0 : i32, i32
  }
  func.func @transform_6(%arg0: i32) -> (i32, i32, i32) {
    %c0_i32 = arith.constant 0 : i32
    %c0_i32_0 = arith.constant 0 : i32
    %c0_i32_1 = arith.constant 0 : i32
    return %arg0, %c0_i32, %c0_i32_0 : i32, i32, i32
  }
  func.func @transform_7(%arg0: i32) -> (i32, i32, i32) {
    %c0_i32 = arith.constant 0 : i32
    %c0_i32_0 = arith.constant 0 : i32
    %c0_i32_1 = arith.constant 0 : i32
    return %arg0, %c0_i32, %c0_i32_0 : i32, i32, i32
  }
  func.func @transform_8(%arg0: i32) -> (i32, i32, i32) {
    %c0_i32 = arith.constant 0 : i32
    %c0_i32_0 = arith.constant 0 : i32
    %c0_i32_1 = arith.constant 0 : i32
    return %arg0, %c0_i32, %c0_i32_0 : i32, i32, i32
  }
  func.func @transform_9(%arg0: i32) -> (i32, i32, i32) {
    %c0_i32 = arith.constant 0 : i32
    %c0_i32_0 = arith.constant 0 : i32
    %c0_i32_1 = arith.constant 0 : i32
    return %arg0, %c0_i32, %c0_i32_0 : i32, i32, i32
  }
}

</mosaic_0001>

<bundles_post_ra>
// kernel: custom-call
= control target key start
LH: loop header
LB: loop body
LE: loop exit
PB: predicated region body
PF: predicated region fallthrough
CT: control target
= control target key end

     0   :  { %s126_s0 = inlined_call_operand.vmem [shape: f32[2,4,16,16], index: 0, kind: input, shape index: {}]   ;;  %s127_s1 = inlined_call_operand.vmem [shape: f32[2,4,16,16], index: 1, kind: input, shape index: {}]   ;;  %s128_s2 = inlined_call_operand.hbm [shape: c64[2,4,16,16], index: 2, kind: output, shape index: {}]  }
   0x1   :  { %s87_s11 = scalar_lea.hbm %s128_s2, 2048 }
   0x2   :  { %4 = vsyncpa [#allocation0], 0  ;;  %s5_s14 = sshll.u32 %s126_s0, 4  ;;  %s6_s14 = int_to_ptr.vmem [resolvable:$true] %s5_s14 }
   0x3   :  { %s18_s15 = scalar_lea.vmem %s6_s14, 2048  ;;  %p23_p1 = scmp.lt.s32.totalorder %s6_s14, %s6_s14 }
   0x4   :  { %p19_p0 = scmp.ne.s32.totalorder %s6_s14, %s18_s15  ;;  %p24_p2 = scmp.lt.s32.totalorder %s18_s15, %s18_s15 }
   0x6   :  { %p25_p3 = por %p24_p2, %p23_p1 }
   0x8   :  { %p26_p4 = pnand %p25_p3, %p19_p0 }
   0xa   :  { %29 = shalt.err (!%p26_p4)  }
   0xb   :  { %p31_p5 = scmp.ne.s32.totalorder %s128_s2, %s87_s11  ;;  %s32_s0 = scalar_lea.hbm %s128_s2, 4096 }
   0xc   :  { %p33_p6 = scmp.lt.u32.totalorder %s32_s0, %s87_s11  ;;  %p34_p7 = scmp.lt.u32.totalorder %s87_s11, %s128_s2 }
   0xe   :  { %p35_p8 = por %p34_p7, %p33_p6 }
  0x10   :  { %p36_p9 = pnand %p35_p8, %p31_p5 }
  0x12   :  { %39 = shalt.err (!%p36_p9)  }
  0x13   :  { %8 = dma.vmem_to_hbm [thread:$0]  %s6_s14, 2048, %s128_s2, [#allocation0] }
  0x14   :  { %65 = dma.done.wait [#allocation0], 2048  }
  0x15   :  { %66 = vsyncadd [#allocation0], 4294965248 }
  0x16   :  { %10 = vsyncpa [#allocation0], 1 }
  0x17   :  { %11 = vsyncpa [#allocation1], 0  ;;  %s12_s28 = sshll.u32 %s127_s1, 4  ;;  %s13_s28 = int_to_ptr.vmem [resolvable:$true] %s12_s28 }
  0x18   :  { %s40_s29 = scalar_lea.vmem %s13_s28, 2048  ;;  %p45_p11 = scmp.lt.s32.totalorder %s13_s28, %s13_s28 }
  0x19   :  { %p41_p10 = scmp.ne.s32.totalorder %s13_s28, %s40_s29  ;;  %p46_p12 = scmp.lt.s32.totalorder %s40_s29, %s40_s29 }
  0x1b   :  { %p47_p13 = por %p46_p12, %p45_p11 }
  0x1d   :  { %p48_p0 = pnand %p47_p13, %p41_p10 }
  0x1f   :  { %51 = shalt.err (!%p48_p0)  }
  0x20   :  { %p53_p1 = scmp.ne.s32.totalorder %s87_s11, %s32_s0  ;;  %p56_p2 = scmp.lt.u32.totalorder %s32_s0, %s32_s0 }
  0x22   :  { %p57_p3 = por %p56_p2, %p34_p7 }
  0x24   :  { %p59_p4 = por %p57_p3, %p33_p6 }
  0x26   :  { %p60_p5 = pnand %p59_p4, %p53_p1 }
  0x28   :  { %63 = shalt.err (!%p60_p5)  }
  0x29   :  { %15 = dma.vmem_to_hbm [thread:$0]  %s13_s28, 2048, %s87_s11, [#allocation1] }
  0x2a   :  { %67 = dma.done.wait [#allocation1], 2048  }
  0x2b   :  { %68 = vsyncadd [#allocation1], 4294965248 }
  0x2c   :  { %17 = vsyncpa [#allocation1], 1 }

// kernel: encoder_gan_forward.3
= control target key start
LH: loop header
LB: loop body
LE: loop exit
PB: predicated region body
PF: predicated region fallthrough
CT: control target
= control target key end

     0   :  { %s1879_s0 = inlined_call_operand.hbm [shape: f32[2,2], index: 0, kind: input, shape index: {}]   ;;  %s1880_s1 = inlined_call_operand.hbm [shape: f32[2,2], index: 1, kind: input, shape index: {}]   ;;  %s1881_s2 = inlined_call_operand.<no memory space> [shape: f32[1], index: 2, kind: input, shape index: {}]   ;;  %s1882_s3 = inlined_call_operand.hbm [shape: f32[40,512], index: 3, kind: input, shape index: {}]   ;;  %s1883_s4 = inlined_call_operand.hbm [shape: f32[8,40], index: 4, kind: input, shape index: {}]   ;;  %s1884_s5 = inlined_call_operand.hbm [shape: f32[8,256], index: 5, kind: input, shape index: {}]   ;;  %s1885_s6 = inlined_call_operand.hbm [shape: f32[2,8,512], index: 6, kind: input, shape index: {}]   ;;  %s1886_s7 = inlined_call_operand.hbm [shape: f32[2,8,256], index: 7, kind: output, shape index: {0}]   ;;  %s1887_s8 = inlined_call_operand.hbm [shape: f32[2,8,256], index: 8, kind: output, shape index: {1}]   ;;  %s1888_s9 = inlined_call_operand.hbm [shape: f32[2,1,1], index: 9, kind: output, shape index: {2}]  }
   0x1   :  { %1894 = sst [smem:[#allocation27_spill]] %s1879_s0 }
   0x2   :  { %1895 = sst [smem:[#allocation28_spill]] %s1880_s1 }
   0x3   :  { %1896 = sst [smem:[#allocation29_spill]] %s1882_s3 }
   0x4   :  { %1897 = sst [smem:[#allocation30_spill]] %s1883_s4 }
   0x5   :  { %1898 = sst [smem:[#allocation31_spill]] %s1884_s5 }
   0x6   :  { %15 = sst [smem:[#allocation2]] %s1881_s2 }
   0x7   :  { %16 = vsyncpa [#allocation6], 0 }
   0x8   :  { %17 = vsyncpa [#allocation8], 0 }
   0x9   :  { %18 = vsyncpa [#allocation4], 0 }
   0xa   :  { %20 = vsyncpa [#allocation4 + $0x1], 0 }
   0xb   :  { %21 = vsyncpa [#allocation11], 0 }
   0xc   :  { %22 = vsyncpa [#allocation14], 0 }
   0xd   :  { %24 = vsyncpa [#allocation14 + $0x1], 0 }
   0xe   :  { %25 = vsyncpa [#allocation5], 0 }
   0xf   :  { %27 = vsyncpa [#allocation5 + $0x1], 0 }
  0x10   :  { %28 = vsyncpa [#allocation17], 0 }
  0x11   :  { %30 = vsyncpa [#allocation17 + $0x1], 0  ;;  %s1443_s11 = smov 0   ;;  %s1445_s12 = smov 0  }
  0x12   :  { %s1447_s13 = smov 0   ;;  %s1449_s14 = smov 0  }
  0x13 LB: > { %s1464_s2 = sadd.s32 4294967295, %s1375_s14   ;;  %s1892_s15 = sadd.s32 4294967294, %s1375_s14   ;;  %s1375_s14 = sphi %s1449_s14, %s1929_s14   ;;  %s1371_s13 = sphi %s1447_s13, %s1928_s13   ;;  %s1367_s12 = sphi %s1445_s12, %s1927_s12   ;;  %s1363_s11 = sphi %s1443_s11, %s1926_s11  }
  0x14   : > { %p119_p0 = scmp.ne.s32.totalorder %s1367_s12, %s1363_s11  ;;  %p1889_p1 = scmp.eq.s32.totalorder %s1464_s2, 0 }
  0x15   : > { %p217_p3 = scmp.eq.s32.totalorder %s1892_s15, 1  ;;  %p923_p5 = scmp.ge.s32.totalorder %s1375_s14, 1 }
  0x16   : > { %p1475_p4 = por %p1889_p1, %p119_p0  ;;  %p276_p7 = scmp.lt.s32.totalorder %s1375_s14, 3 }
  0x17   : > { %p1480_p6 = por %p217_p3, %p119_p0  ;;  %s1377_s19 = smov [#allocation10]  }
  0x18   : > { %s1899_s16 = scalar_select %p1475_p4, 1, 0 }
  0x19   : > { %s1900_s17 = scalar_select %p1480_p6, 1, 0 }
  0x1a   : > { %p1485_p8 = pnand %p923_p5, %p276_p7  ;;  %s310_s20 = sshll.u32 %s1377_s19, 4  ;;  %s311_s20 = int_to_ptr.vmem [resolvable:$true] %s310_s20 }
  0x1b   : > { %s1378_s22 = smov [#allocation12]   ;;  %s1903_s4 = sld [smem:[#allocation30_spill]] }
  0x1c   : > { %s1901_s18 = scalar_select %p1485_p8, 1, 0 }
  0x1d   : > { %p993_p10 = pneg %p1485_p8  ;;  %s321_s23 = sshll.u32 %s1378_s22, 4  ;;  %s1498_s23 = int_to_ptr.vmem [resolvable:$true] %s321_s23 }
  0x1f   : > { %p1494_p11 = pnand %p993_p10, %p1889_p1 }
  0x21   : > { %s1091_s26 = scalar_lea.hbm %s1903_s4, 128  ;;  %p1508_p13 = pneg %p1494_p11 }
  0x22   : > { %p1092_p12 = scmp.ne.s32.totalorder %s1903_s4, %s1091_s26  ;;  %p1098_p5 = scmp.lt.u32.totalorder %s1091_s26, %s1903_s4 }
  0x24   : > { %p1094_p0 = pnand %p1508_p13, %p1092_p12 }
  0x26   : > { %p1095_p3 = pneg %p1094_p0 }
  0x28   : > { %p1100_p7 = pnand %p1098_p5, %p1095_p3 }
  0x2a   : > { %1103 = shalt.err (!%p1100_p7)
}
  0x2b   : > { %s1104_s19 = scalar_lea.vmem %s311_s20, 128  ;;  %p1112_p2 = scmp.lt.s32.totalorder %s311_s20, %s311_s20 }
  0x2c   : > { %p1105_p10 = scmp.ne.s32.totalorder %s311_s20, %s1104_s19  ;;  %p1113_p6 = scmp.lt.s32.totalorder %s1104_s19, %s1104_s19 }
  0x2e   : > { %p1107_p9 = pnand %p1105_p10, %p1508_p13  ;;  %p1114_p4 = por %p1113_p6, %p1112_p2 }
  0x30   : > { %p1108_p1 = pneg %p1107_p9 }
  0x32   : > { %p1115_p8 = pnand %p1114_p4, %p1108_p1 }
  0x34   : > { %1118 = shalt.err (!%p1115_p8)
}
  0x35   : > { %1002 = dma.hbm_to_vmem [thread:$0]  (!%p1494_p11), %s1903_s4, 128, %s311_s20, [#allocation11]  }
  0x36   : > { %s1905_s0 = sld [smem:[#allocation27_spill]] }
  0x3c   : > { %s1119_s27 = scalar_lea.hbm %s1905_s0, 32 }
  0x3d   : > { %p1120_p9 = scmp.ne.s32.totalorder %s1905_s0, %s1119_s27  ;;  %p1126_p1 = scmp.lt.u32.totalorder %s1119_s27, %s1905_s0 }
  0x3f   : > { %p1122_p12 = pnand %p1120_p9, %p1508_p13 }
  0x41   : > { %p1123_p2 = pneg %p1122_p12 }
  0x43   : > { %p1128_p4 = pnand %p1126_p1, %p1123_p2 }
  0x45   : > { %1131 = shalt.err (!%p1128_p4)
}
  0x46   : > { %s1379_s22 = smov [#allocation3]   ;;  %s1906_s1 = sld [smem:[#allocation28_spill]] }
  0x47   : > { %996 = dma.hbm_to_smem (!%p1494_p11), %s1905_s0, 32, %s1379_s22, [#allocation6]  }
  0x4c   : > { %s1132_s28 = scalar_lea.hbm %s1906_s1, 32 }
  0x4d   : > { %p1133_p6 = scmp.ne.s32.totalorder %s1906_s1, %s1132_s28  ;;  %p1139_p3 = scmp.lt.u32.totalorder %s1132_s28, %s1906_s1 }
  0x4f   : > { %p1135_p8 = pnand %p1133_p6, %p1508_p13 }
  0x51   : > { %p1136_p0 = pneg %p1135_p8 }
  0x53   : > { %p1141_p5 = pnand %p1139_p3, %p1136_p0 }
  0x55   : > { %1144 = shalt.err (!%p1141_p5)
}
  0x56   : > { %s1380_s19 = smov [#allocation7]   ;;  %s1907_s5 = sld [smem:[#allocation31_spill]] }
  0x57   : > { %999 = dma.hbm_to_smem (!%p1494_p11), %s1906_s1, 32, %s1380_s19, [#allocation8]  }
  0x5c   : > { %s1145_s25 = scalar_lea.hbm %s1907_s5, 256 }
  0x5d   : > { %p1146_p7 = scmp.ne.s32.totalorder %s1907_s5, %s1145_s25  ;;  %p1152_p12 = scmp.lt.u32.totalorder %s1145_s25, %s1907_s5 }
  0x5f   : > { %p1148_p10 = pnand %p1146_p7, %p1508_p13 }
  0x61   : > { %p1149_p9 = pneg %p1148_p10 }
  0x63   : > { %p1154_p2 = pnand %p1152_p12, %p1149_p9 }
  0x65   : > { %1157 = shalt.err (!%p1154_p2)
}
  0x66   : > { %s1158_s10 = scalar_lea.vmem %s1498_s23, 256  ;;  %p1166_p8 = scmp.lt.s32.totalorder %s1498_s23, %s1498_s23 }
  0x67   : > { %p1159_p1 = scmp.ne.s32.totalorder %s1498_s23, %s1158_s10  ;;  %p1167_p0 = scmp.lt.s32.totalorder %s1158_s10, %s1158_s10 }
  0x69   : > { %p1161_p4 = pnand %p1159_p1, %p1508_p13  ;;  %p1168_p3 = por %p1167_p0, %p1166_p8 }
  0x6b   : > { %p1162_p6 = pneg %p1161_p4 }
  0x6d   : > { %p1169_p5 = pnand %p1168_p3, %p1162_p6 }
  0x6f   : > { %1172 = shalt.err (!%p1169_p5)
}
  0x70   : > { %1005 = dma.hbm_to_vmem [thread:$0]  (!%p1494_p11), %s1907_s5, 256, %s1498_s23, [#allocation11]  }
  0x71   : > { %s1580_s29 = sadd.s32 1, %s1375_s14   ;;  %s106_s21 = sadd.s32 1, %s1371_s13 }
  0x72   : > { %s103_s20 = ssub.s32 %s1375_s14, %s1580_s29  ;;  %p113_p13 = scmp.ne.s32.totalorder %s1371_s13, %s1367_s12 }
  0x73   : > { %p104_p7 = scmp.eq.s32.totalorder %s103_s20, 0  ;;  %p114_p10 = scmp.eq.s32.totalorder %s1375_s14, 0 }
  0x74   : > { %p1908_p9 = scmp.eq.s32.totalorder %s1464_s2, 1  ;;  %p1027_p2 = scmp.lt.s32.totalorder %s1375_s14, 2 }
  0x75   : > { %s1596_s15 = scalar_select %p104_p7, %s1371_s13, %s106_s21  }
  0x76   : > { %p1590_p12 = por %p1908_p9, %p113_p13  ;;  %p115_p1 = por %p114_p10, %p113_p13 }
  0x77   : > { %1910 = sst [smem:[#allocation26_spill]] %s1596_s15  ;;  %s1599_s25 = sand.u32 1, %s1371_s13  }
  0x78   : > { %s1909_s24 = scalar_select %p1590_p12, 1, 0 }
  0x79   : > { %s965_s23 = smul.u32 80, %s1599_s25  ;;  %s953_s26 = sshll.u32 %s1375_s14, 8 }
  0x7a   : > { %p1603_p11 = pnand %p1027_p2, %p115_p1  ;;  %s1912_s3 = sld [smem:[#allocation29_spill]] }
  0x7b   : > { %s336_s19 = scalar_lea.vmem [#allocation9], %s965_s23  ;;  %s333_s21 = scalar_lea.sflag [#allocation4], %s1599_s25 }
  0x7c   : > { %s343_s22 = sshll.u32 %s336_s19, 4  ;;  %p1175_p6 = pneg %p1603_p11  ;;  %s1612_s22 = int_to_ptr.vmem [resolvable:$true] %s343_s22 }
  0x80   : > { %s1610_s10 = scalar_lea.hbm %s1912_s3, %s953_s26  ;;  %s1178_s27 = scalar_lea.hbm %s1912_s3, 2560 }
  0x81   : > { %s1173_s20 = scalar_lea.hbm %s1610_s10, 1280  ;;  %p1179_p3 = scmp.lt.u32.totalorder %s1610_s10, %s1912_s3 }
  0x82   : > { %p1174_p4 = scmp.ne.s32.totalorder %s1610_s10, %s1173_s20  ;;  %p1180_p5 = scmp.lt.u32.totalorder %s1178_s27, %s1173_s20 }
  0x83   : > { %p1182_p7 = scmp.lt.u32.totalorder %s1173_s20, %s1610_s10 }
  0x84   : > { %p1176_p8 = pnand %p1175_p6, %p1174_p4  ;;  %p1181_p13 = por %p1180_p5, %p1179_p3 }
  0x86   : > { %p1177_p0 = pneg %p1176_p8  ;;  %p1183_p10 = por %p1182_p7, %p1181_p13 }
  0x88   : > { %p1184_p9 = pnand %p1183_p10, %p1177_p0 }
  0x8a   : > { %1187 = shalt.err (!%p1184_p9)
}
  0x8b   : > { %s1188_s23 = scalar_lea.vmem %s1612_s22, 1280  ;;  %s1381_s19 = smov [#allocation9]  }
  0x8c   : > { %p1189_p2 = scmp.ne.s32.totalorder %s1612_s22, %s1188_s23  ;;  %s1193_s28 = sshll.u32 %s1381_s19, 4  ;;  %s1194_s28 = int_to_ptr.vmem [resolvable:$false] %s1193_s28 }
  0x8d   : > { %s1195_s0 = scalar_lea.vmem %s1194_s28, 2560  ;;  %p1196_p8 = scmp.lt.s32.totalorder %s1612_s22, %s1194_s28 }
  0x8e   : > { %p1191_p1 = pnand %p1189_p2, %p1175_p6  ;;  %p1197_p3 = scmp.lt.s32.totalorder %s1195_s0, %s1188_s23 }
  0x90   : > { %p1192_p4 = pneg %p1191_p1  ;;  %p1198_p5 = por %p1197_p3, %p1196_p8 }
  0x92   : > { %p1199_p13 = pnand %p1198_p5, %p1192_p4 }
  0x94   : > { %1202 = shalt.err (!%p1199_p13)
}
  0x95   : > { %s1382_s1 = smov 512   ;;  %s1383_s20 = smov 256  }
  0x96   : > { %s1384_s26 = smov 16   ;;  %s931_s27 = sshll.u32 %s1599_s25, 5 }
  0x97   : > { %1009 = dma.hbm_to_vmem [thread:$0]  (!%p1603_p11), %s1610_s10, 1280, %s1612_s22, %s333_s21, %s1382_s1, %s1383_s20, %s1384_s26  }
  0x98   : > { %s954_s19 = sshll.u32 %s1375_s14, 9  ;;  %s357_s3 = scalar_lea.vmem [#allocation13], %s931_s27 }
  0x99   : > { %s1647_s0 = scalar_lea.hbm %s1885_s6, %s954_s19  ;;  %s365_s4 = sshll.u32 %s357_s3, 4  ;;  %s366_s4 = int_to_ptr.vmem [resolvable:$true] %s365_s4 }
  0x9a   : > { %s354_s5 = scalar_lea.sflag [#allocation14], %s1599_s25  ;;  %s1203_s15 = scalar_lea.hbm %s1647_s0, 512 }
  0x9b   : > { %p1204_p0 = scmp.ne.s32.totalorder %s1647_s0, %s1203_s15  ;;  %s1208_s21 = scalar_lea.hbm %s1885_s6, 1024 }
  0x9c   : > { %p1209_p9 = scmp.lt.u32.totalorder %s1647_s0, %s1885_s6  ;;  %p1210_p2 = scmp.lt.u32.totalorder %s1208_s21, %s1203_s15 }
  0x9d   : > { %p1206_p7 = pnand %p1204_p0, %p1175_p6  ;;  %p1212_p4 = scmp.lt.u32.totalorder %s1203_s15, %s1647_s0 }
  0x9e   : > { %p1211_p1 = por %p1210_p2, %p1209_p9 }
  0x9f   : > { %p1207_p10 = pneg %p1206_p7 }
  0xa0   : > { %p1213_p8 = por %p1212_p4, %p1211_p1 }
  0xa2   : > { %p1214_p3 = pnand %p1213_p8, %p1207_p10 }
  0xa4   : > { %1217 = shalt.err (!%p1214_p3)
}
  0xa5   : > { %s1218_s3 = scalar_lea.vmem %s366_s4, 512  ;;  %s1385_s25 = smov [#allocation13]  }
  0xa6   : > { %p1219_p5 = scmp.ne.s32.totalorder %s366_s4, %s1218_s3  ;;  %s1223_s26 = sshll.u32 %s1385_s25, 4  ;;  %s1224_s26 = int_to_ptr.vmem [resolvable:$false] %s1223_s26 }
  0xa7   : > { %s1225_s27 = scalar_lea.vmem %s1224_s26, 1024  ;;  %p1226_p7 = scmp.lt.s32.totalorder %s366_s4, %s1224_s26 }
  0xa8   : > { %p1221_p13 = pnand %p1219_p5, %p1175_p6  ;;  %p1227_p12 = scmp.lt.s32.totalorder %s1225_s27, %s1218_s3 }
  0xaa   : > { %p1222_p0 = pneg %p1221_p13  ;;  %p1228_p2 = por %p1227_p12, %p1226_p7 }
  0xac   : > { %p1229_p9 = pnand %p1228_p2, %p1222_p0 }
  0xae   : > { %1232 = shalt.err (!%p1229_p9)
}
  0xaf   : > { %1012 = dma.hbm_to_vmem [thread:$0]  (!%p1603_p11), %s1647_s0, 512, %s366_s4, %s354_s5  }
  0xb0   : > { %p1913_p10 = scmp.ne.s32.totalorder %s1901_s18, 0 }
  0xb1   : > { %p1914_p1 = scmp.eq.s32.totalorder (!%p1913_p10), %s1464_s2, 0 }
  0xb2   : > { %374 = sbr.rel (%p1913_p10) target bundleno = 878 (0x36e), region = 48 }
  0xb9   : > { %1334 = dma.done.wait (%p1914_p1), [#allocation6], 32   ;;  %p1915_p6 = pmov %p1914_p1 }
  0xba   : > { %p1916_p4 = pmov %p1914_p1 }
  0xbb   : > { %1336 = vsyncadd (%p1915_p6), [#allocation6], 4294967264 }
  0xbc   : > { %1338 = dma.done.wait (%p1916_p4), [#allocation8], 32   ;;  %p1917_p12 = pmov %p1914_p1 }
  0xbd   : > { %s1680_s15 = sand.u32 1, %s1367_s12   ;;  %p1918_p11 = scmp.ne.s32.totalorder %s1899_s16, 0 }
  0xbe   : > { %1340 = vsyncadd (%p1917_p12), [#allocation8], 4294967264  ;;  %s966_s4 = smul.u32 80, %s1680_s15  ;;  %s385_s5 = scalar_lea.sflag [#allocation4], %s1680_s15 }
  0xc0   : > { %s1684_s18 = scalar_lea.vmem [#allocation9], %s966_s4 }
  0xc1   : > { %1342 = dma.done.wait (%p1918_p11), %s385_s5, 1280  }
  0xc2   : > { %1344 = vsyncadd (%p1918_p11), %s385_s5, 4294966016  ;;  %p1919_p8 = pmov %p1914_p1 }
  0xc3   : > { %p1920_p3 = pmov %p1914_p1 }
  0xc4   : > { %1346 = dma.done.wait (%p1919_p8), [#allocation11], 384  }
  0xc5   : > { %1348 = vsyncadd (%p1920_p3), [#allocation11], 4294966912  ;;  %s939_s30 = sshll.u32 %s1680_s15, 5  ;;  %s402_s19 = scalar_lea.sflag [#allocation14], %s1680_s15 }
  0xc6   : > { %s1696_s23 = scalar_lea.vmem [#allocation13], %s939_s30 }
  0xc7   : > { %1350 = dma.done.wait (%p1918_p11), %s402_s19, 512  }
  0xc8   : > { %1352 = vsyncadd (%p1918_p11), %s402_s19, 4294966784 }
  0xc9   : > { %410 = sfence }
  0xca   : > { %v458_v0 = vld [vmem:[%s1684_s18 + $0x8] sm:$0xff]  ;;  %v460_v1 = vld [vmem:[%s1684_s18 + $0x18] sm:$0xff]  ;;  %v457_v2 = vld [vmem:[%s1684_s18] sm:$0xff]  ;;  %v1386_v7 = vmov 0.0   ;;  %vm467_vm0 = vcmask 326656   ;;  %s1723_s16 = sshll.u32 %s1464_s2, 7 }
  0xcb   : > { %v957_v3 = vpack.c.bf16 %v460_v1, %v458_v0  ;;  %v459_v4 = vld [vmem:[%s1684_s18 + $0x10] sm:$0xff]  ;;  %v462_v5 = vld [vmem:[%s1684_s18 + $0x28] sm:$0xff]  ;;  %v464_v6 = vld [vmem:[%s1684_s18 + $0x38] sm:$0xff]  ;;  %535 = vmatprep.mubr.f32.mxu0 %v1386_v7  ;;  %s604_s28 = sld [smem:[#allocation3 + %s1723_s16]]  ;;  %s632_s10 = sadd.s32 1, %s1723_s16 }
  0xcc   : > { %v959_v8 = vpack.c.bf16 %v459_v4, %v457_v2  ;;  %v961_v9 = vpack.c.bf16 %v464_v6, %v462_v5  ;;  %v461_v10 = vld [vmem:[%s1684_s18 + $0x20] sm:$0xff]  ;;  %v463_v11 = vld [vmem:[%s1684_s18 + $0x30] sm:$0xff]  ;;  %v466_v13 = vld [vmem:[%s1684_s18 + $0x48] sm:$0xff]  ;;  %s605_s0 = sld [smem:[#allocation7 + %s1723_s16]]  ;;  %s940_s20 = sshll.u32 %s1680_s15, 4 }
  0xcd   : > { %958 = vmatprep.subr.bf16.mxu0 %v957_v3  ;;  %v963_v12 = vpack.c.bf16 %v463_v11, %v461_v10  ;;  %v465_v14 = vld [vmem:[%s1684_s18 + $0x40] sm:$0xff]  ;;  %v1713_v16 = vld [vmem:[%s1696_s23 + $0x10] sm:$0xff]  ;;  %v1744_v51 = vld [vmem:[%s1696_s23] sm:$0xff]  ;;  %s633_s22 = sld [smem:[#allocation3 + %s632_s10]]  ;;  %s685_s3 = sand.u32 1, %s1464_s2  }
  0xce   : > { %960 = vmatpush1.bf16.msra.mxu0 %v959_v8  ;;  %v456_v15 = vld [vmem:[#allocation10] sm:$0xff]  ;;  %v1716_v17 = vld [vmem:[%s1696_s23 + $0x18] sm:$0xff]  ;;  %v569_v18 = vmul.f32 %v1713_v16, %v1713_v16  ;;  %v567_v55 = vmul.f32 %v1744_v51, %v1744_v51  ;;  %s634_s21 = sld [smem:[#allocation7 + %s632_s10]]  ;;  %s955_s25 = sshll.u32 %s1464_s2, 8 }
  0xcf   : > { %962 = vmatprep.subr.bf16.mxu0 %v961_v9  ;;  %v570_v19 = vmul.f32 %v1716_v17, %v1716_v17  ;;  %v1747_v52 = vld [vmem:[%s1696_s23 + $0x8] sm:$0xff]  ;;  %s548_s1 = sld [smem:[#allocation2]]  ;;  %s448_s26 = scalar_lea.vmem [#allocation16], %s940_s20 }
  0xd0   : > { %v583_v20 = vrot.slane %v569_v18, 4  ;;  %v568_v56 = vmul.f32 %v1747_v52, %v1747_v52  ;;  %v571_v57 = vrot.slane %v567_v55, 4  ;;  %s718_s27 = sshll.u32 %s448_s26, 4  ;;  %s441_s4 = scalar_lea.vmem [#allocation15], %s940_s20  ;;  %s1776_s27 = int_to_ptr.vmem [resolvable:$true] %s718_s27 }
  0xd1   : > { %v589_v21 = vrot.slane %v570_v19, 4  ;;  %v1727_v29 = vstv %s604_s28  ;;  %s704_s5 = sshll.u32 %s441_s4, 4  ;;  %s1772_s19 = scalar_lea.hbm %s1887_s8, %s955_s25  ;;  %s1785_s5 = int_to_ptr.vmem [resolvable:$true] %s704_s5 }
  0xd2   : > { %964 = vmatpush1.bf16.msra.mxu0 %v963_v12  ;;  %v584_v22 = vadd.f32 %v583_v20, %v569_v18  ;;  %v1729_v30 = vstv %s605_s0  ;;  %v577_v58 = vrot.slane %v568_v56, 4  ;;  %v572_v59 = vadd.f32 %v571_v57, %v567_v55  ;;  %v546_v20 = vld [vmem:[#allocation12] sm:$0xff]  ;;  %s1783_s28 = scalar_lea.hbm %s1886_s7, %s955_s25  ;;  %s1787_s0 = scalar_lea.sflag [#allocation17], %s685_s3 }
  0xd3   : > { %479 = vmatprep.subr.mxu0 %v466_v13  ;;  %v590_v23 = vadd.f32 %v589_v21, %v570_v19  ;;  %v635_v5 = vstv %s633_s22  ;;  %v547_v21 = vld [vmem:[#allocation12 + $0x8] sm:$0xff]  ;;  %s1233_s10 = scalar_lea.vmem %s1776_s27, 256  ;;  %p1921_p13 = scmp.ne.s32.totalorder %s1909_s24, 0 }
  0xd4   : > { %v585_v24 = vrot.slane %v584_v22, 2  ;;  %v578_v60 = vadd.f32 %v577_v58, %v568_v56  ;;  %v573_v63 = vrot.slane %v572_v59, 2  ;;  %v638_v9 = vstv %s634_s21  ;;  %p1234_p5 = scmp.ne.s32.totalorder %s1776_s27, %s1233_s10  ;;  %s1387_s22 = smov [#allocation16]  }
  0xd5   : > { %v591_v25 = vrot.slane %v590_v23, 2  ;;  %s1237_s21 = sshll.u32 %s1387_s22, 4  ;;  %s1238_s21 = int_to_ptr.vmem [resolvable:$false] %s1237_s21 }
  0xd6   : > { %480 = vmatpush1.msra.mxu0 %v465_v14  ;;  %v586_v26 = vadd.f32 %v585_v24, %v584_v22  ;;  %v579_v0 = vrot.slane %v578_v60, 2  ;;  %v574_v7 = vadd.f32 %v573_v63, %v572_v59  ;;  %p1235_p0 = pnand %p1234_p5, %p1921_p13  ;;  %p1240_p2 = scmp.lt.s32.totalorder %s1776_s27, %s1238_s21 }
  0xd7   : > { %942 = vmatmul.mubr.msk.f32.vlgmr.msra.gmra.mrb[0].mxu0 %vm467_vm0, %v456_v15  ;;  %v592_v27 = vadd.f32 %v591_v25, %v590_v23 }
  0xd8   : > { %v587_v28 = vrot.slane %v586_v26, 1  ;;  %v580_v8 = vadd.f32 %v579_v0, %v578_v60  ;;  %v575_v18 = vrot.slane %v574_v7, 1  ;;  %p1236_p7 = pneg %p1235_p0 }
  0xd9   : > { %v593_v31 = vrot.slane %v592_v27, 1 }
  0xda   : > { %v588_v37 = vadd.f32 %v587_v28, %v586_v26  ;;  %v581_v19 = vrot.slane %v580_v8, 1  ;;  %v576_v26 = vadd.f32 %v575_v18, %v574_v7 }
  0xdb   : > { %v594_v41 = vadd.f32 %v593_v31, %v592_v27 }
  0xdc   : > { %v582_v27 = vadd.f32 %v581_v19, %v580_v8 }
  0xdd   : > { %v624_v43 = vadd.f32 %v594_v41, %v588_v37 }
  0xde   : > { %v595_v31 = vadd.f32 %v582_v27, %v576_v26 }
 0x1aa   : > { %v537_v32 = vpop.f32.mrb[0].mxu0 }
 0x1ab   : > { %v1732_v33 = vmul.f32 %v1727_v29, %v537_v32  ;;  %v1735_v34 = vmul.f32 %v1729_v30, %v537_v32  ;;  %v539_v35 = vpop.f32.mrb[1].mxu0  ;;  %v549_v36 = vmul.f32 %v537_v32, %v537_v32  ;;  %v636_v12 = vmul.f32 %v635_v5, %v537_v32 }
 0x1ac   : > { %v1738_v38 = vmul.f32 %v1727_v29, %v539_v35  ;;  %v1741_v39 = vmul.f32 %v1729_v30, %v539_v35  ;;  %v550_v40 = vmul.f32 %v539_v35, %v539_v35  ;;  %v637_v13 = vmul.f32 %v635_v5, %v539_v35 }
 0x1ae   : > { %v551_v42 = vadd.f32 %v550_v40, %v549_v36 }
 0x1b0   : > { %552 = vadd.xlane.f32.xlu0 %v551_v42  ;;  %v654_v42 = vstv %s548_s1  ;;  %s1239_s1 = scalar_lea.vmem %s1238_s21, 512 }
 0x1b1   : > { %p1241_p9 = scmp.lt.s32.totalorder %s1239_s1, %s1233_s10 }
 0x1b3   : > { %p1242_p10 = por %p1241_p9, %p1240_p2 }
 0x1b4   : > { %625 = vadd.xlane.f32.xlu0 %v624_v43 }
 0x1b5   : > { %p1243_p1 = pnand %p1242_p10, %p1236_p7 }
 0x23d   : > { %v553_v44 = vpop.xlane.xlu0 %552 }
 0x23e   : > { %v554_v45 = vrot.slane %v553_v44, 4 }
 0x240   : > { %v555_v46 = vadd.f32 %v554_v45, %v553_v44 }
 0x241   : > { %v626_v49 = vpop.xlane.xlu0 %625 }
 0x242   : > { %v556_v47 = vrot.slane %v555_v46, 2  ;;  %v627_v54 = vadd.f32 1e-20, %v626_v49 }
 0x244   : > { %v557_v48 = vadd.f32 %v556_v47, %v555_v46 }
 0x246   : > { %v558_v50 = vrot.slane %v557_v48, 1 }
 0x248   : > { %v559_v53 = vadd.f32 %v558_v50, %v557_v48 }
 0x24a   : > { %1073 = vrsqrt.f32 %v559_v53  ;;  %vm562_vm1 = vcmp.eq.f32.partialorder %v559_v53, inf  ;;  %v565_v2 = vand.u32 2147483648, %v559_v53  ;;  %vm564_vm2 = vcmp.eq.f32.partialorder %v559_v53, 0.0 }
 0x24b   : > { %1075 = vrsqrt.f32 %v627_v54 }
 0x254   : > { %v1074_v61 = vpop.eup %1073 }
 0x255   : > { %v561_v62 = vmul.f32 %v1074_v61, %v559_v53  ;;  %v1076_v1 = vpop.eup %1075 }
 0x257   : > { %v563_v3 = vsel %vm562_vm1, %v559_v53, %v561_v62 }
 0x258   : > { %v566_v4 = vsel %vm564_vm2, %v565_v2, %v563_v3 }
 0x259   : > { %v629_v6 = vmul.f32 %v1076_v1, %v566_v4 }
 0x25b   : > { %v630_v10 = vmul.f32 %v629_v6, %v1713_v16  ;;  %v631_v11 = vmul.f32 %v629_v6, %v1716_v17 }
 0x25d   : > { %v639_v14 = vmul.f32 %v638_v9, %v630_v10  ;;  %v640_v15 = vmul.f32 %v638_v9, %v631_v11 }
 0x25f   : > { %v641_v22 = vsub.f32 %v636_v12, %v639_v14  ;;  %v642_v23 = vsub.f32 %v637_v13, %v640_v15 }
 0x261   : > { %v643_v24 = vmul.f32 %v641_v22, %v546_v20  ;;  %v644_v25 = vmul.f32 %v642_v23, %v547_v21 }
 0x263   : > { %v645_v28 = vadd.f32 %v644_v25, %v643_v24 }
 0x265   : > { %646 = vadd.xlane.f32.xlu1 %v645_v28 }
 0x269   : > { %596 = vadd.xlane.f32.xlu1 %v595_v31 }
 0x2f2   : > { %v647_v16 = vpop.xlane.xlu1 %646 }
 0x2f3   : > { %v648_v17 = vrot.slane %v647_v16, 4 }
 0x2f5   : > { %v649_v32 = vadd.f32 %v648_v17, %v647_v16 }
 0x2f6   : > { %v597_v35 = vpop.xlane.xlu1 %596 }
 0x2f7   : > { %v650_v36 = vrot.slane %v649_v32, 2  ;;  %v598_v37 = vadd.f32 1e-20, %v597_v35 }
 0x2f9   : > { %v651_v40 = vadd.f32 %v650_v36, %v649_v32  ;;  %1077 = vrsqrt.f32 %v598_v37 }
 0x2fb   : > { %v652_v41 = vrot.slane %v651_v40, 1 }
 0x2fd   : > { %v653_v43 = vadd.f32 %v652_v41, %v651_v40 }
 0x2ff   : > { %v1756_v44 = vadd.f32 %v654_v42, %v653_v43 }
 0x301   : > { %v657_v45 = vsub.f32 0.0, %v1756_v44  ;;  %v663_v46 = vmul.f32 1.442695, %v1756_v44 }
 0x303   : > { %v1078_v47 = vpop.eup %1077  ;;  %v658_v48 = vmul.f32 1.442695, %v657_v45  ;;  %1079 = vpow2.f32 %v663_v46 }
 0x304   : > { %v600_v49 = vmul.f32 %v1078_v47, %v566_v4 }
 0x305   : > { %1081 = vpow2.f32 %v658_v48 }
 0x306   : > { %v601_v50 = vmul.f32 %v600_v49, %v1744_v51  ;;  %v602_v53 = vmul.f32 %v600_v49, %v1747_v52 }
 0x308   : > { %v618_v54 = vmul.f32 %v1727_v29, %v601_v50  ;;  %v619_v55 = vmul.f32 %v1727_v29, %v602_v53  ;;  %v610_v56 = vmul.f32 %v1729_v30, %v601_v50  ;;  %v611_v57 = vmul.f32 %v1729_v30, %v602_v53 }
 0x30a   : > { %v620_v51 = vadd.f32 %v618_v54, %v1735_v34  ;;  %v621_v52 = vadd.f32 %v619_v55, %v1741_v39  ;;  %v612_v29 = vsub.f32 %v1732_v33, %v610_v56  ;;  %v613_v30 = vsub.f32 %v1738_v38, %v611_v57 }
 0x30c   : > { %622 = vst [vmem:[%s448_s26] sm:$0xff] %v620_v51  ;;  %623 = vst [vmem:[%s448_s26 + $0x8] sm:$0xff] %v621_v52 }
 0x30d   : > { %614 = vst [vmem:[%s441_s4] sm:$0xff] %v612_v29  ;;  %615 = vst [vmem:[%s441_s4 + $0x8] sm:$0xff] %v613_v30  ;;  %v1080_v34 = vpop.eup %1079 }
 0x30e   : > { %1246 = shalt.err (!%p1243_p1)
}
 0x30f   : > { %s1247_s20 = scalar_lea.hbm %s1772_s19, 256  ;;  %s1251_s26 = scalar_lea.hbm %s1887_s8, 512 }
 0x310   : > { %p1248_p6 = scmp.ne.s32.totalorder %s1772_s19, %s1247_s20  ;;  %p1252_p11 = scmp.lt.u32.totalorder %s1772_s19, %s1887_s8 }
 0x311   : > { %p1253_p8 = scmp.lt.u32.totalorder %s1251_s26, %s1247_s20  ;;  %p1255_p5 = scmp.lt.u32.totalorder %s1247_s20, %s1772_s19 }
 0x312   : > { %p1249_p4 = pnand %p1248_p6, %p1921_p13 }
 0x313   : > { %p1254_p3 = por %p1253_p8, %p1252_p11 }
 0x314   : > { %p1250_p12 = pneg %p1249_p4 }
 0x315   : > { %p1256_p0 = por %p1255_p5, %p1254_p3 }
 0x317   : > { %p1257_p7 = pnand %p1256_p0, %p1250_p12 }
 0x319   : > { %1260 = shalt.err (!%p1257_p7)
}
 0x31a   : > { %988 = dma.vmem_to_hbm [thread:$0]  (%p1921_p13), %s1776_s27, 256, %s1772_s19, %s1787_s0   ;;  %v665_v33 = vadd.f32 1.0, %v1080_v34 }
 0x31b   : > { %s681_s30 = scalar_lea.sflag [#allocation5], %s1680_s15  ;;  %s1261_s23 = scalar_lea.vmem %s1785_s5, 256 }
 0x31c   : > { %p1262_p2 = scmp.ne.s32.totalorder %s1785_s5, %s1261_s23  ;;  %s1388_s16 = smov [#allocation15]  }
 0x31d   : > { %s1265_s10 = sshll.u32 %s1388_s16, 4  ;;  %s1266_s10 = int_to_ptr.vmem [resolvable:$false] %s1265_s10 }
 0x31e   : > { %p1263_p9 = pnand %p1262_p2, %p1921_p13  ;;  %s1267_s22 = scalar_lea.vmem %s1266_s10, 512 }
 0x31f   : > { %p1268_p1 = scmp.lt.s32.totalorder %s1785_s5, %s1266_s10  ;;  %p1269_p6 = scmp.lt.s32.totalorder %s1267_s22, %s1261_s23 }
 0x320   : > { %p1264_p10 = pneg %p1263_p9 }
 0x321   : > { %p1270_p4 = por %p1269_p6, %p1268_p1 }
 0x323   : > { %p1271_p12 = pnand %p1270_p4, %p1264_p10 }
 0x325   : > { %1274 = shalt.err (!%p1271_p12)
}
 0x326   : > { %s1275_s27 = scalar_lea.hbm %s1783_s28, 256  ;;  %s1279_s1 = scalar_lea.hbm %s1886_s7, 512 }
 0x327   : > { %p1276_p11 = scmp.ne.s32.totalorder %s1783_s28, %s1275_s27  ;;  %p1280_p5 = scmp.lt.u32.totalorder %s1783_s28, %s1886_s7 }
 0x328   : > { %p1281_p0 = scmp.lt.u32.totalorder %s1279_s1, %s1275_s27  ;;  %p1283_p2 = scmp.lt.u32.totalorder %s1275_s27, %s1783_s28 }
 0x329   : > { %p1277_p8 = pnand %p1276_p11, %p1921_p13 }
 0x32a   : > { %p1282_p7 = por %p1281_p0, %p1280_p5 }
 0x32b   : > { %p1278_p3 = pneg %p1277_p8 }
 0x32c   : > { %p1284_p9 = por %p1283_p2, %p1282_p7 }
 0x32e   : > { %p1285_p10 = pnand %p1284_p9, %p1278_p3 }
 0x330   : > { %1288 = shalt.err (!%p1285_p10)
}
 0x331   : > { %987 = dma.vmem_to_hbm [thread:$0]  (%p1921_p13), %s1785_s5, 256, %s1783_s28, %s681_s30   ;;  %v1082_v38 = vpop.eup %1081  ;;  %1083 = vrcp.f32 %v665_v33  ;;  %vm656_vm3 = vcmp.ge.f32.partialorder %v1756_v44, 0.0  ;;  %vm678_vm4 = vcmask 0  }
 0x332   : > { %v660_v39 = vadd.f32 1.0, %v1082_v38  ;;  %s950_s5 = sshll.u32 %s1464_s2, 4  ;;  %s454_s28 = scalar_lea.vmem [#allocation18], %s1680_s15 }
 0x333   : > { %s731_s25 = sshll.u32 %s454_s28, 4  ;;  %s1839_s18 = scalar_lea.hbm %s1888_s9, %s950_s5  ;;  %s732_s25 = int_to_ptr.vmem [resolvable:$true] %s731_s25 }
 0x334   : > { %1085 = vrcp.f32 %v660_v39  ;;  %s1289_s30 = scalar_lea.vmem %s732_s25, 16  ;;  %s1389_s23 = smov [#allocation18]  }
 0x335   : > { %p1290_p1 = scmp.ne.s32.totalorder %s732_s25, %s1289_s30  ;;  %s1293_s2 = sshll.u32 %s1389_s23, 4  ;;  %s1294_s2 = int_to_ptr.vmem [resolvable:$false] %s1293_s2 }
 0x336   : > { %s1295_s15 = scalar_lea.vmem %s1294_s2, 32  ;;  %p1296_p12 = scmp.lt.s32.totalorder %s732_s25, %s1294_s2 }
 0x337   : > { %p1291_p6 = pnand %p1290_p1, %p1921_p13  ;;  %p1297_p11 = scmp.lt.s32.totalorder %s1295_s15, %s1289_s30 }
 0x339   : > { %p1292_p4 = pneg %p1291_p6  ;;  %p1298_p8 = por %p1297_p11, %p1296_p12 }
 0x33b   : > { %v1084_v58 = vpop.eup %1083  ;;  %p1299_p3 = pnand %p1298_p8, %p1292_p4 }
 0x33c   : > { %v667_v59 = vmul.f32 %v1084_v58, %v1080_v34 }
 0x33e   : > { %v1086_v60 = vpop.eup %1085 }
 0x33f   : > { %v668_v61 = vsel %vm656_vm3, %v1086_v60, %v667_v59 }
 0x340   : > { %v670_v62 = vsub.f32 0.0, %v668_v61  ;;  %v669_v3 = vsub.f32 %v668_v61, %v668_v61 }
 0x342   : > { %v671_v63 = vmul.f32 1.442695, %v670_v62 }
 0x344   : > { %1087 = vpow2.f32 %v671_v63 }
 0x34e   : > { %v1088_v0 = vpop.eup %1087 }
 0x34f   : > { %v673_v1 = vadd.f32 1.0, %v1088_v0 }
 0x351   : > { %1089 = vlog2.f32 %v673_v1 }
 0x35b   : > { %v1090_v2 = vpop.eup %1089 }
 0x35c   : > { %v675_v4 = vmul.f32 0.6931472, %v1090_v2 }
 0x35e   : > { %v676_v5 = vadd.f32 %v675_v4, %v669_v3 }
 0x360   : > { %679 = vst.msk [vmem:[%s454_s28] sm:$0x1] %vm678_vm4, %v676_v5 }
 0x361   : > { %1302 = shalt.err (!%p1299_p3)
}
 0x362   : > { %s1303_s16 = scalar_lea.hbm %s1839_s18, 16  ;;  %s1307_s27 = scalar_lea.hbm %s1888_s9, 32 }
 0x363   : > { %p1304_p5 = scmp.ne.s32.totalorder %s1839_s18, %s1303_s16  ;;  %p1308_p2 = scmp.lt.u32.totalorder %s1839_s18, %s1888_s9 }
 0x364   : > { %p1309_p9 = scmp.lt.u32.totalorder %s1307_s27, %s1303_s16  ;;  %p1311_p1 = scmp.lt.u32.totalorder %s1303_s16, %s1839_s18 }
 0x365   : > { %p1305_p0 = pnand %p1304_p5, %p1921_p13 }
 0x366   : > { %p1310_p10 = por %p1309_p9, %p1308_p2 }
 0x367   : > { %p1306_p7 = pneg %p1305_p0 }
 0x368   : > { %p1312_p6 = por %p1311_p1, %p1310_p10 }
 0x36a   : > { %p1313_p4 = pnand %p1312_p6, %p1306_p7 }
 0x36c   : > { %1316 = shalt.err (!%p1313_p4)
}
 0x36d   : > { %989 = dma.vmem_to_hbm [thread:$0]  (%p1921_p13), %s732_s25, 16, %s1839_s18, %s1787_s0  }
 0x36e PF: > { %s743_s1 = sand.u32 1, %s1363_s11   ;;  %p1922_p12 = scmp.ne.s32.totalorder %s1900_s17, 0 }
 0x36f   : > { %p1923_p11 = scmp.ge.s32.totalorder %s1375_s14, 2  ;;  %s744_s20 = scalar_lea.sflag [#allocation5], %s743_s1 }
 0x371   : > { %p1014_p8 = pnand %p1923_p11, %p1922_p12 }
 0x373   : > { %1354 = dma.done.wait (!%p1014_p8), %s744_s20, 256  }
 0x374   : > { %1356 = vsyncadd (!%p1014_p8), %s744_s20, 4294967040  ;;  %s1924_s3 = sadd.s32 4294967294, %s1375_s14  }
 0x375   : > { %s752_s5 = sand.u32 1, %s1924_s3  }
 0x376   : > { %s753_s28 = scalar_lea.sflag [#allocation17], %s752_s5 }
 0x377   : > { %1358 = dma.done.wait (!%p1014_p8), %s753_s28, 272  }
 0x378   : > { %1360 = vsyncadd (!%p1014_p8), %s753_s28, 4294967024  ;;  %s1925_s24 = sld [smem:[#allocation26_spill]]  ;;  %p33_p13 = scmp.ge.s32.totalorder %s1580_s29, 4  }
 0x379   : > { %s1926_s11 = smov %s1367_s12  ;;  %s1927_s12 = smov %s1371_s13 }
 0x37a   : > { %s1929_s14 = smov %s1580_s29  ;;  %35 = sbr.rel (!%p33_p13) target bundleno = 19 (0x13), region = 155 }
 0x37e   : > { %s1928_s13 = smov %s1925_s24 }
 0x381   :  { %766 = vsyncpa [#allocation4], 1 }
 0x382   :  { %768 = vsyncpa [#allocation4 + $0x1], 1 }
 0x383   :  { %769 = vsyncpa [#allocation11], 1 }
 0x384   :  { %770 = vsyncpa [#allocation14], 1 }
 0x385   :  { %772 = vsyncpa [#allocation14 + $0x1], 1 }
 0x386   :  { %773 = vsyncpa [#allocation5], 1 }
 0x387   :  { %775 = vsyncpa [#allocation5 + $0x1], 1 }
 0x388   :  { %776 = vsyncpa [#allocation17], 1 }
 0x389   :  { %778 = vsyncpa [#allocation17 + $0x1], 1 }
 0x38a   :  { %779 = vsyncpa [#allocation6], 1 }
 0x38b   :  { %781 = vsyncpa [#allocation6 + $0x1], 1 }
 0x38c   :  { %782 = vsyncpa [#allocation8], 1 }

</bundles_post_ra>
